<compile_context>
chip_gen: v7x
topology: tpu7x:2x2x1
jax: 0.10.0
libtpu: 0.0.40
codegen_flags: <defaults>
</compile_context>

<pallas_src>
import jax
import jax.numpy as jnp
from jax.experimental import pallas as pl
from jax.experimental.pallas import tpu as pltpu

# ---- static hyper-params (small, consistent with the module) ----
B = 2                      # batch
J = 17                     # joints; vis_score has one score per joint -> V = J
INPUT_DIM = 2              # cfg.NETWORK.INPUT_DIM (2D coordinates)
CH = 4                     # 'channels' ctor argument
T = 8                      # frames  (conv H)
N = 4                      # views   (conv W)

V = J                      # expand_conv in_channels
COUT = V * INPUT_DIM * CH  # expand_conv out_channels = 136
C = INPUT_DIM * J          # pos_2d channel dim = 34  (x/y per joint)
K = COUT // C              # = CH = 4   (from conv_p.view(B, C, -1, T, N))
TN = T * N                 # flattened spatial = 32


# --------------------------------------------------------------------------
# Kernel: 1x1 conv (per-k MXU matmul) + 'bcktn,bctn->bktn' contraction, fused.
#   vis_ref : (B, V, TN)   native NCHW layout with (T, N) collapsed
#   pos_ref : (B, C, TN)
#   w_ref   : (K, C, V)    pre-packed:  w_ref[k, c, v] = W_conv[c*K + k, v]
#   out_ref : (B, K, TN)   reshapes to (B, K, T, N) with zero data movement
# --------------------------------------------------------------------------
def myconv_kernel(vis_ref, pos_ref, w_ref, out_ref):
    for b in range(B):                                   # B = 2, static unroll
        vis_b = vis_ref[b]                               # (V, TN)
        pos_b = pos_ref[b]                               # (C, TN)
        rows = []
        for k in range(K):                               # K = 4, static unroll
            # 1x1 conv restricted to output-channel group k: one MXU pass.
            conv_kb = jnp.dot(w_ref[k], vis_b,
                              preferred_element_type=jnp.float32)   # (C, TN)
            # einsum reduction over c (sublane reduce on the XLU).
            rows.append(jnp.sum(conv_kb * pos_b, axis=0, keepdims=True))  # (1, TN)
        out_ref[b] = jnp.concatenate(rows, axis=0)       # single (K, TN) store


def pack_weight(weight):
    """torch 1x1-conv weight (COUT, V) -> (K, C, V), done ONCE at init time.

    w_packed[k, c, v] = weight[c*K + k, v], matching conv_p.view(B, C, K, T, N).
    """
    return jnp.transpose(weight.reshape(C, K, V), (1, 0, 2))


def my_conv_forward(pos_2d, vis_score, w_packed):
    """pos_2d: (B, C, T, N); vis_score: (B, V, T, N); w_packed: (K, C, V)."""
    # Collapsing the trailing (T, N) dims is metadata-only (row-major contiguous).
    vis = vis_score.reshape(B, V, TN)
    pos = pos_2d.reshape(B, C, TN)

    out = pl.pallas_call(
        myconv_kernel,
        grid=(1,),                       # whole problem in one resident VMEM tile
        in_specs=[pl.BlockSpec((B, V, TN), lambda i: (0, 0, 0)),
                  pl.BlockSpec((B, C, TN), lambda i: (0, 0, 0)),
                  pl.BlockSpec((K, C, V), lambda i: (0, 0, 0))],
        out_specs=pl.BlockSpec((B, K, TN), lambda i: (0, 0, 0)),
        out_shape=jax.ShapeDtypeStruct((B, K, TN), jnp.float32),
        compiler_params=pltpu.CompilerParams(dimension_semantics=("arbitrary",)),
    )(vis, pos, w_packed)

    # (B, K, T*N) -> (B, K, T, N): free reshape, already 'bktn' ordered.
    return out.reshape(B, K, T, N)


# Pure-JAX reference of the PyTorch forward (for verification).
def my_conv_reference(pos_2d, vis_score, weight):
    conv_p = jnp.einsum('ov,bvtn->botn', weight, vis_score)      # 1x1 conv, no bias
    conv_p = conv_p.reshape(B, C, K, T, N)
    return jnp.einsum('bcktn,bctn->bktn', conv_p, pos_2d)


if __name__ == "__main__":
    key = jax.random.PRNGKey(0)
    k_pos, k_vis, k_w = jax.random.split(key, 3)

    pos_2d = jax.random.normal(k_pos, (B, C, T, N), dtype=jnp.float32)
    vis_score = jax.random.uniform(k_vis, (B, V, T, N), dtype=jnp.float32)
    weight = 0.2 * jax.random.normal(k_w, (COUT, V), dtype=jnp.float32)

    # Weight repack happens once (module-init time), outside the forward path.
    w_packed = pack_weight(weight)
    jax.block_until_ready(w_packed)

    x = my_conv_forward(pos_2d, vis_score, w_packed)
    jax.block_until_ready(x)

    x_ref = my_conv_reference(pos_2d, vis_score, weight)
    assert x.shape == (B, K, T, N)
    assert jnp.allclose(x, x_ref, atol=1e-4, rtol=1e-4), \
        f"max abs err {jnp.max(jnp.abs(x - x_ref))}"
    print("KERNEL_OK")
</pallas_src>

<mosaic_0001>
module attributes {stable_mosaic.version = 11 : i64} {
  func.func @myconv_kernel(%arg0: i32, %arg1: memref<2x17x32xf32, #tpu.memory_space<vmem>>, %arg2: memref<2x34x32xf32, #tpu.memory_space<vmem>>, %arg3: memref<4x34x17xf32, #tpu.memory_space<vmem>>, %arg4: memref<2x4x32xf32, #tpu.memory_space<vmem>>) attributes {dimension_semantics = [#tpu.dimension_semantics<arbitrary>], iteration_bounds = array<i64: 1>, scalar_prefetch = 0 : i64, scratch_operands = 0 : i64, tpu.core_type = #tpu.core_type<tc>, window_params = [{pipeline_mode = #tpu.pipeline_mode<synchronous>, transform_indices = @transform_0, window_bounds = array<i64: 2, 17, 32>}, {pipeline_mode = #tpu.pipeline_mode<synchronous>, transform_indices = @transform_1, window_bounds = array<i64: 2, 34, 32>}, {pipeline_mode = #tpu.pipeline_mode<synchronous>, transform_indices = @transform_2, window_bounds = array<i64: 4, 34, 17>}, {pipeline_mode = #tpu.pipeline_mode<synchronous>, transform_indices = @transform_3, window_bounds = array<i64: 2, 4, 32>}]} {
    %c0 = arith.constant 0 : index
    %c0_0 = arith.constant 0 : index
    %c0_1 = arith.constant 0 : index
    %0 = vector.load %arg1[%c0, %c0_0, %c0_1] : memref<2x17x32xf32, #tpu.memory_space<vmem>>, vector<1x17x32xf32>
    %1 = vector.shape_cast %0 : vector<1x17x32xf32> to vector<17x32xf32>
    %c0_2 = arith.constant 0 : index
    %c0_3 = arith.constant 0 : index
    %c0_4 = arith.constant 0 : index
    %2 = vector.load %arg2[%c0_2, %c0_3, %c0_4] : memref<2x34x32xf32, #tpu.memory_space<vmem>>, vector<1x34x32xf32>
    %3 = vector.shape_cast %2 : vector<1x34x32xf32> to vector<34x32xf32>
    %c0_5 = arith.constant 0 : index
    %c0_6 = arith.constant 0 : index
    %c0_7 = arith.constant 0 : index
    %4 = vector.load %arg3[%c0_5, %c0_6, %c0_7] : memref<4x34x17xf32, #tpu.memory_space<vmem>>, vector<1x34x17xf32>
    %5 = vector.shape_cast %4 : vector<1x34x17xf32> to vector<34x17xf32>
    %cst = arith.constant dense<0.000000e+00> : vector<34x32xf32>
    %6 = tpu.matmul %5, %1, %cst {dimension_numbers = #tpu.dot_dimension_numbers<[1], [0], [0], [1], [0, 0, 1, 1], [], []>} : vector<34x17xf32>, vector<17x32xf32>, vector<34x32xf32> -> vector<34x32xf32>
    %7 = arith.mulf %6, %3 : vector<34x32xf32>
    %cst_8 = arith.constant dense<0.000000e+00> : vector<32xf32>
    %8 = vector.multi_reduction <add>, %7, %cst_8 [0] : vector<34x32xf32> to vector<32xf32>
    %9 = vector.shape_cast %8 : vector<32xf32> to vector<1x32xf32>
    %c1 = arith.constant 1 : index
    %c0_9 = arith.constant 0 : index
    %c0_10 = arith.constant 0 : index
    %10 = vector.load %arg3[%c1, %c0_9, %c0_10] : memref<4x34x17xf32, #tpu.memory_space<vmem>>, vector<1x34x17xf32>
    %11 = vector.shape_cast %10 : vector<1x34x17xf32> to vector<34x17xf32>
    %cst_11 = arith.constant dense<0.000000e+00> : vector<34x32xf32>
    %12 = tpu.matmul %11, %1, %cst_11 {dimension_numbers = #tpu.dot_dimension_numbers<[1], [0], [0], [1], [0, 0, 1, 1], [], []>} : vector<34x17xf32>, vector<17x32xf32>, vector<34x32xf32> -> vector<34x32xf32>
    %13 = arith.mulf %12, %3 : vector<34x32xf32>
    %cst_12 = arith.constant dense<0.000000e+00> : vector<32xf32>
    %14 = vector.multi_reduction <add>, %13, %cst_12 [0] : vector<34x32xf32> to vector<32xf32>
    %15 = vector.shape_cast %14 : vector<32xf32> to vector<1x32xf32>
    %c2 = arith.constant 2 : index
    %c0_13 = arith.constant 0 : index
    %c0_14 = arith.constant 0 : index
    %16 = vector.load %arg3[%c2, %c0_13, %c0_14] : memref<4x34x17xf32, #tpu.memory_space<vmem>>, vector<1x34x17xf32>
    %17 = vector.shape_cast %16 : vector<1x34x17xf32> to vector<34x17xf32>
    %cst_15 = arith.constant dense<0.000000e+00> : vector<34x32xf32>
    %18 = tpu.matmul %17, %1, %cst_15 {dimension_numbers = #tpu.dot_dimension_numbers<[1], [0], [0], [1], [0, 0, 1, 1], [], []>} : vector<34x17xf32>, vector<17x32xf32>, vector<34x32xf32> -> vector<34x32xf32>
    %19 = arith.mulf %18, %3 : vector<34x32xf32>
    %cst_16 = arith.constant dense<0.000000e+00> : vector<32xf32>
    %20 = vector.multi_reduction <add>, %19, %cst_16 [0] : vector<34x32xf32> to vector<32xf32>
    %21 = vector.shape_cast %20 : vector<32xf32> to vector<1x32xf32>
    %c3 = arith.constant 3 : index
    %c0_17 = arith.constant 0 : index
    %c0_18 = arith.constant 0 : index
    %22 = vector.load %arg3[%c3, %c0_17, %c0_18] : memref<4x34x17xf32, #tpu.memory_space<vmem>>, vector<1x34x17xf32>
    %23 = vector.shape_cast %22 : vector<1x34x17xf32> to vector<34x17xf32>
    %cst_19 = arith.constant dense<0.000000e+00> : vector<34x32xf32>
    %24 = tpu.matmul %23, %1, %cst_19 {dimension_numbers = #tpu.dot_dimension_numbers<[1], [0], [0], [1], [0, 0, 1, 1], [], []>} : vector<34x17xf32>, vector<17x32xf32>, vector<34x32xf32> -> vector<34x32xf32>
    %25 = arith.mulf %24, %3 : vector<34x32xf32>
    %cst_20 = arith.constant dense<0.000000e+00> : vector<32xf32>
    %26 = vector.multi_reduction <add>, %25, %cst_20 [0] : vector<34x32xf32> to vector<32xf32>
    %27 = vector.shape_cast %26 : vector<32xf32> to vector<1x32xf32>
    %28 = tpu.concatenate %9, %15, %21, %27 in 0 : vector<1x32xf32>, vector<1x32xf32>, vector<1x32xf32>, vector<1x32xf32> -> vector<4x32xf32>
    %c0_21 = arith.constant 0 : index
    %c0_22 = arith.constant 0 : index
    %c0_23 = arith.constant 0 : index
    %29 = vector.load %arg4[%c0_21, %c0_22, %c0_23] : memref<2x4x32xf32, #tpu.memory_space<vmem>>, vector<1x4x32xf32>
    %30 = vector.shape_cast %29 : vector<1x4x32xf32> to vector<4x32xf32>
    %31 = vector.shape_cast %28 : vector<4x32xf32> to vector<1x4x32xf32>
    tpu.vector_store %arg4[%c0_21, %c0_22, %c0_23], %31 {strides = array<i32>} : memref<2x4x32xf32, #tpu.memory_space<vmem>>, vector<1x4x32xf32>,
    %c1_24 = arith.constant 1 : index
    %c0_25 = arith.constant 0 : index
    %c0_26 = arith.constant 0 : index
    %32 = vector.load %arg1[%c1_24, %c0_25, %c0_26] : memref<2x17x32xf32, #tpu.memory_space<vmem>>, vector<1x17x32xf32>
    %33 = vector.shape_cast %32 : vector<1x17x32xf32> to vector<17x32xf32>
    %c1_27 = arith.constant 1 : index
    %c0_28 = arith.constant 0 : index
    %c0_29 = arith.constant 0 : index
    %34 = vector.load %arg2[%c1_27, %c0_28, %c0_29] : memref<2x34x32xf32, #tpu.memory_space<vmem>>, vector<1x34x32xf32>
    %35 = vector.shape_cast %34 : vector<1x34x32xf32> to vector<34x32xf32>
    %c0_30 = arith.constant 0 : index
    %c0_31 = arith.constant 0 : index
    %c0_32 = arith.constant 0 : index
    %36 = vector.load %arg3[%c0_30, %c0_31, %c0_32] : memref<4x34x17xf32, #tpu.memory_space<vmem>>, vector<1x34x17xf32>
    %37 = vector.shape_cast %36 : vector<1x34x17xf32> to vector<34x17xf32>
    %cst_33 = arith.constant dense<0.000000e+00> : vector<34x32xf32>
    %38 = tpu.matmul %37, %33, %cst_33 {dimension_numbers = #tpu.dot_dimension_numbers<[1], [0], [0], [1], [0, 0, 1, 1], [], []>} : vector<34x17xf32>, vector<17x32xf32>, vector<34x32xf32> -> vector<34x32xf32>
    %39 = arith.mulf %38, %35 : vector<34x32xf32>
    %cst_34 = arith.constant dense<0.000000e+00> : vector<32xf32>
    %40 = vector.multi_reduction <add>, %39, %cst_34 [0] : vector<34x32xf32> to vector<32xf32>
    %41 = vector.shape_cast %40 : vector<32xf32> to vector<1x32xf32>
    %c1_35 = arith.constant 1 : index
    %c0_36 = arith.constant 0 : index
    %c0_37 = arith.constant 0 : index
    %42 = vector.load %arg3[%c1_35, %c0_36, %c0_37] : memref<4x34x17xf32, #tpu.memory_space<vmem>>, vector<1x34x17xf32>
    %43 = vector.shape_cast %42 : vector<1x34x17xf32> to vector<34x17xf32>
    %cst_38 = arith.constant dense<0.000000e+00> : vector<34x32xf32>
    %44 = tpu.matmul %43, %33, %cst_38 {dimension_numbers = #tpu.dot_dimension_numbers<[1], [0], [0], [1], [0, 0, 1, 1], [], []>} : vector<34x17xf32>, vector<17x32xf32>, vector<34x32xf32> -> vector<34x32xf32>
    %45 = arith.mulf %44, %35 : vector<34x32xf32>
    %cst_39 = arith.constant dense<0.000000e+00> : vector<32xf32>
    %46 = vector.multi_reduction <add>, %45, %cst_39 [0] : vector<34x32xf32> to vector<32xf32>
    %47 = vector.shape_cast %46 : vector<32xf32> to vector<1x32xf32>
    %c2_40 = arith.constant 2 : index
    %c0_41 = arith.constant 0 : index
    %c0_42 = arith.constant 0 : index
    %48 = vector.load %arg3[%c2_40, %c0_41, %c0_42] : memref<4x34x17xf32, #tpu.memory_space<vmem>>, vector<1x34x17xf32>
    %49 = vector.shape_cast %48 : vector<1x34x17xf32> to vector<34x17xf32>
    %cst_43 = arith.constant dense<0.000000e+00> : vector<34x32xf32>
    %50 = tpu.matmul %49, %33, %cst_43 {dimension_numbers = #tpu.dot_dimension_numbers<[1], [0], [0], [1], [0, 0, 1, 1], [], []>} : vector<34x17xf32>, vector<17x32xf32>, vector<34x32xf32> -> vector<34x32xf32>
    %51 = arith.mulf %50, %35 : vector<34x32xf32>
    %cst_44 = arith.constant dense<0.000000e+00> : vector<32xf32>
    %52 = vector.multi_reduction <add>, %51, %cst_44 [0] : vector<34x32xf32> to vector<32xf32>
    %53 = vector.shape_cast %52 : vector<32xf32> to vector<1x32xf32>
    %c3_45 = arith.constant 3 : index
    %c0_46 = arith.constant 0 : index
    %c0_47 = arith.constant 0 : index
    %54 = vector.load %arg3[%c3_45, %c0_46, %c0_47] : memref<4x34x17xf32, #tpu.memory_space<vmem>>, vector<1x34x17xf32>
    %55 = vector.shape_cast %54 : vector<1x34x17xf32> to vector<34x17xf32>
    %cst_48 = arith.constant dense<0.000000e+00> : vector<34x32xf32>
    %56 = tpu.matmul %55, %33, %cst_48 {dimension_numbers = #tpu.dot_dimension_numbers<[1], [0], [0], [1], [0, 0, 1, 1], [], []>} : vector<34x17xf32>, vector<17x32xf32>, vector<34x32xf32> -> vector<34x32xf32>
    %57 = arith.mulf %56, %35 : vector<34x32xf32>
    %cst_49 = arith.constant dense<0.000000e+00> : vector<32xf32>
    %58 = vector.multi_reduction <add>, %57, %cst_49 [0] : vector<34x32xf32> to vector<32xf32>
    %59 = vector.shape_cast %58 : vector<32xf32> to vector<1x32xf32>
    %60 = tpu.concatenate %41, %47, %53, %59 in 0 : vector<1x32xf32>, vector<1x32xf32>, vector<1x32xf32>, vector<1x32xf32> -> vector<4x32xf32>
    %c1_50 = arith.constant 1 : index
    %c0_51 = arith.constant 0 : index
    %c0_52 = arith.constant 0 : index
    %61 = vector.load %arg4[%c1_50, %c0_51, %c0_52] : memref<2x4x32xf32, #tpu.memory_space<vmem>>, vector<1x4x32xf32>
    %62 = vector.shape_cast %61 : vector<1x4x32xf32> to vector<4x32xf32>
    %63 = vector.shape_cast %60 : vector<4x32xf32> to vector<1x4x32xf32>
    tpu.vector_store %arg4[%c1_50, %c0_51, %c0_52], %63 {strides = array<i32>} : memref<2x4x32xf32, #tpu.memory_space<vmem>>, vector<1x4x32xf32>,
    return
  }
  func.func @transform_0(%arg0: i32) -> (i32, i32, i32) {
    %c0_i32 = arith.constant 0 : i32
    %c0_i32_0 = arith.constant 0 : i32
    %c0_i32_1 = arith.constant 0 : i32
    %c0_i32_2 = arith.constant 0 : i32
    return %c0_i32, %c0_i32_0, %c0_i32_1 : i32, i32, i32
  }
  func.func @transform_1(%arg0: i32) -> (i32, i32, i32) {
    %c0_i32 = arith.constant 0 : i32
    %c0_i32_0 = arith.constant 0 : i32
    %c0_i32_1 = arith.constant 0 : i32
    %c0_i32_2 = arith.constant 0 : i32
    return %c0_i32, %c0_i32_0, %c0_i32_1 : i32, i32, i32
  }
  func.func @transform_2(%arg0: i32) -> (i32, i32, i32) {
    %c0_i32 = arith.constant 0 : i32
    %c0_i32_0 = arith.constant 0 : i32
    %c0_i32_1 = arith.constant 0 : i32
    %c0_i32_2 = arith.constant 0 : i32
    return %c0_i32, %c0_i32_0, %c0_i32_1 : i32, i32, i32
  }
  func.func @transform_3(%arg0: i32) -> (i32, i32, i32) {
    %c0_i32 = arith.constant 0 : i32
    %c0_i32_0 = arith.constant 0 : i32
    %c0_i32_1 = arith.constant 0 : i32
    %c0_i32_2 = arith.constant 0 : i32
    return %c0_i32, %c0_i32_0, %c0_i32_1 : i32, i32, i32
  }
}

</mosaic_0001>

<bundles_post_ra>
// kernel: tpu_custom_call.1
= control target key start
LH: loop header
LB: loop body
LE: loop exit
PB: predicated region body
PF: predicated region fallthrough
CT: control target
= control target key end

     0   :  { %v1486_v2 = vmov 0.0|0.0   ;;  %vm1487_vm0 = vmmov 0   ;;  %v1488_v4 = vmov 0.0   ;;  %vm44_vm1 = vcmask 1040384   ;;  %s1941_s0 = inlined_call_operand.vmem [shape: f32[2,17,32], index: 0, kind: input, shape index: {}]   ;;  %s1942_s1 = inlined_call_operand.vmem [shape: f32[2,34,32], index: 1, kind: input, shape index: {}]   ;;  %s1943_s2 = inlined_call_operand.vmem [shape: f32[4,34,17], index: 2, kind: input, shape index: {}]   ;;  %s1944_s3 = inlined_call_operand.hbm [shape: f32[2,4,32], index: 3, kind: output, shape index: {}]  }
   0x1   :  { %v15_v0 = vld [vmem:[%s1941_s0] sm:$0xff]  ;;  %v16_v1 = vld [vmem:[%s1941_s0 + $0x8] sm:$0xff]  ;;  %1432 = vmatprep.subr.bf16.mxu0 %v1486_v2  ;;  %1435 = vmatprep.subr.bf16.mxu1 %v1486_v2  ;;  %v17_v5 = vld [vmem:[%s1941_s0 + $0x10] sm:$0x1]  ;;  %vm28_vm2 = vcmask 138240  }
   0x2   :  { %v1433_v3 = vpack.c.bf16 %v16_v1, %v15_v0  ;;  %1270 = vmatprep.mubr.msk.f32.mxu0 %vm1487_vm0, %v1488_v4  ;;  %1291 = vmatprep.mubr.msk.f32.mxu1 %vm1487_vm0, %v1488_v4  ;;  %v1532_v6 = vld [vmem:[%s1943_s2] sm:$0xff]  ;;  %v1537_v7 = vld [vmem:[%s1943_s2 + $0x28] sm:$0xff]  ;;  %v1555_v9 = vld [vmem:[%s1943_s2 + $0x30] sm:$0xff] }
   0x3   :  { %v1550_v8 = vld [vmem:[%s1943_s2 + $0x8] sm:$0xff] }
   0x4   :  { %1434 = vmatpush3.bf16.msra.mxu0 %v1433_v3  ;;  %1437 = vmatpush3.bf16.msra.mxu1 %v1433_v3 }
   0x5   :  { %1268 = vmatprep.subr.mxu0 %v1488_v4  ;;  %1289 = vmatprep.subr.mxu1 %v1488_v4 }
   0x8   :  { %1269 = vmatpush3.msk.msra.mxu0 %vm44_vm1, %v17_v5  ;;  %1290 = vmatpush3.msk.msra.mxu1 %vm44_vm1, %v17_v5 }
   0x9   :  { %1271 = vmatmul.mubr.msk.f32.vlgmr.msra.gmra.mrb[0].mxu0 %vm28_vm2, %v1532_v6  ;;  %1292 = vmatmul.mubr.msk.f32.vlgmr.msra.gmra.mrb[0].mxu1 %vm28_vm2, %v1537_v7 }
   0xa   :  { %1438 = vmatprep.subr.bf16.mxu0 %v1486_v2  ;;  %1441 = vmatprep.subr.bf16.mxu1 %v1486_v2 }
   0xb   :  { %1440 = vmatpush3.bf16.msra.mxu0 %v1433_v3  ;;  %1443 = vmatpush3.bf16.msra.mxu1 %v1433_v3 }
   0xc   :  { %8 = vsyncpa [#allocation3], 0  ;;  %1273 = vmatprep.mubr.msk.f32.mxu0 %vm1487_vm0, %v1488_v4  ;;  %1294 = vmatprep.mubr.msk.f32.mxu1 %vm1487_vm0, %v1488_v4  ;;  %v1572_v10 = vld [vmem:[%s1943_s2 + $0x10] sm:$0xff]  ;;  %v1577_v11 = vld [vmem:[%s1943_s2 + $0x38] sm:$0xff]  ;;  %vm143_vm3 = vcmask 261120   ;;  %vm151_vm4 = vcmask 254976  }
   0xd   :  { %1274 = vmatmul.mubr.msk.f32.gmra.mrb[2].mxu0 %vm28_vm2, %v1550_v8  ;;  %1295 = vmatmul.mubr.msk.f32.gmra.mrb[2].mxu1 %vm28_vm2, %v1555_v9  ;;  %v1594_v12 = vld [vmem:[%s1943_s2 + $0x18] sm:$0xff]  ;;  %v1599_v13 = vld [vmem:[%s1943_s2 + $0x40] sm:$0xff]  ;;  %v1124_v15 = vld [vmem:[%s1943_s2 + $0x48] sm:$0x3]  ;;  %vm554_vm5 = vcmask 1041408   ;;  %vm556_vm6 = vcmask 1042432  }
   0xe   :  { %1276 = vmatprep.mubr.msk.f32.mxu0 %vm1487_vm0, %v1488_v4  ;;  %1297 = vmatprep.mubr.msk.f32.mxu1 %vm1487_vm0, %v1488_v4  ;;  %v27_v14 = vld [vmem:[%s1943_s2 + $0x20] sm:$0x3]  ;;  %v1153_v16 = vld [vmem:[%s1941_s0 + $0x18] sm:$0xff]  ;;  %v1632_v18 = vld [vmem:[%s1943_s2 + $0x50] sm:$0xff]  ;;  %vm558_vm7 = vcmask 257024  }
   0xf   :  { %1310 = vmatprep.subr.mxu0 %v1488_v4  ;;  %1331 = vmatprep.subr.mxu1 %v1488_v4  ;;  %v1154_v17 = vld [vmem:[%s1941_s0 + $0x20] sm:$0xff]  ;;  %v1637_v19 = vld [vmem:[%s1943_s2 + $0x78] sm:$0xff]  ;;  %v1155_v23 = vld [vmem:[%s1941_s0 + $0x28] sm:$0x1] }
  0x10   :  { %1311 = vmatpush3.msk.msra.mxu0 %vm44_vm1, %v17_v5  ;;  %1332 = vmatpush3.msk.msra.mxu1 %vm44_vm1, %v17_v5  ;;  %v1445_v20 = vpack.c.bf16 %v1154_v17, %v1153_v16  ;;  %v1646_v21 = vld [vmem:[%s1943_s2 + $0x58] sm:$0xff]  ;;  %v1651_v22 = vld [vmem:[%s1943_s2 + $0x80] sm:$0xff]  ;;  %v1144_v25 = vld [vmem:[%s1943_s2 + $0x88] sm:$0xff] }
  0x11   :  { %1277 = vmatmul.mubr.msk.f32.gmra.mrb[4].mxu0 %vm28_vm2, %v1572_v10  ;;  %1298 = vmatmul.mubr.msk.f32.gmra.mrb[4].mxu1 %vm28_vm2, %v1577_v11  ;;  %v1133_v24 = vld [vmem:[%s1943_s2 + $0x60] sm:$0xff]  ;;  %v1134_v26 = vld [vmem:[%s1943_s2 + $0x68] sm:$0xff]  ;;  %v1145_v27 = vld [vmem:[%s1943_s2 + $0x90] sm:$0xff] }
  0x12   :  { %1279 = vmatprep.mubr.msk.f32.mxu0 %vm1487_vm0, %v1488_v4  ;;  %1300 = vmatprep.mubr.msk.f32.mxu1 %vm1487_vm0, %v1488_v4  ;;  %v1135_v28 = vld [vmem:[%s1943_s2 + $0x70] sm:$0x3]  ;;  %v1146_v29 = vld [vmem:[%s1943_s2 + $0x98] sm:$0x3]  ;;  %v574_v30 = vld [vmem:[%s1943_s2 + $0x20] sm:$0x3] }
  0x13   :  { %1444 = vmatprep.subr.bf16.mxu0 %v1486_v2  ;;  %1447 = vmatprep.subr.bf16.mxu1 %v1486_v2  ;;  %v1171_v31 = vld [vmem:[%s1943_s2 + $0x48] sm:$0x3]  ;;  %v1182_v32 = vld [vmem:[%s1943_s2 + $0x70] sm:$0x3]  ;;  %v1193_v33 = vld [vmem:[%s1943_s2 + $0x98] sm:$0x3] }
  0x14   :  { %v18_v34 = vld [vmem:[%s1942_s1] sm:$0xff]  ;;  %v1800_v39 = vld [vmem:[%s1942_s1 + $0x8] sm:$0xff]  ;;  %v1807_v48 = vld [vmem:[%s1942_s1 + $0x10] sm:$0xff] }
  0x15   :  { %1280 = vmatmul.mubr.msk.f32.gmra.mrb[6].mxu0 %vm28_vm2, %v1594_v12  ;;  %1301 = vmatmul.mubr.msk.f32.gmra.mrb[6].mxu1 %vm28_vm2, %v1599_v13  ;;  %v1818_v61 = vld [vmem:[%s1942_s1 + $0x18] sm:$0xff] }
  0x16   :  { %1282 = vmatprep.mubr.msk.f32.mxu0 %vm1487_vm0, %v1488_v4  ;;  %1303 = vmatprep.mubr.msk.f32.mxu1 %vm1487_vm0, %v1488_v4 }
  0x19   :  { %1283 = vmatmul.mubr.msk.f32.gmra.mrb[8].mxu0 %vm28_vm2, %v27_v14  ;;  %1304 = vmatmul.mubr.msk.f32.gmra.mrb[8].mxu1 %vm28_vm2, %v1124_v15 }
  0x1a   :  { %1312 = vmatprep.mubr.msk.f32.mxu0 %vm1487_vm0, %v1488_v4  ;;  %1333 = vmatprep.mubr.msk.f32.mxu1 %vm1487_vm0, %v1488_v4 }
  0x1d   :  { %1313 = vmatmul.mubr.msk.f32.vlgmr.msra.gmra.mrb[10].mxu0 %vm28_vm2, %v1632_v18  ;;  %1334 = vmatmul.mubr.msk.f32.vlgmr.msra.gmra.mrb[10].mxu1 %vm28_vm2, %v1637_v19 }
  0x1e   :  { %1446 = vmatpush3.bf16.msra.mxu0 %v1445_v20  ;;  %1449 = vmatpush3.bf16.msra.mxu1 %v1445_v20 }
  0x1f   :  { %1315 = vmatprep.mubr.msk.f32.mxu0 %vm1487_vm0, %v1488_v4  ;;  %1336 = vmatprep.mubr.msk.f32.mxu1 %vm1487_vm0, %v1488_v4 }
  0x20   :  { %1352 = vmatprep.subr.mxu0 %v1488_v4  ;;  %1373 = vmatprep.subr.mxu1 %v1488_v4 }
  0x21   :  { %1316 = vmatmul.mubr.msk.f32.gmra.mrb[12].mxu0 %vm28_vm2, %v1646_v21  ;;  %1337 = vmatmul.mubr.msk.f32.gmra.mrb[12].mxu1 %vm28_vm2, %v1651_v22 }
  0x22   :  { %1318 = vmatprep.mubr.msk.f32.mxu0 %vm1487_vm0, %v1488_v4  ;;  %1339 = vmatprep.mubr.msk.f32.mxu1 %vm1487_vm0, %v1488_v4 }
  0x23   :  { %1353 = vmatpush3.msk.msra.mxu0 %vm44_vm1, %v1155_v23  ;;  %1374 = vmatpush3.msk.msra.mxu1 %vm44_vm1, %v1155_v23 }
  0x24   :  { %1450 = vmatprep.subr.bf16.mxu0 %v1486_v2  ;;  %1453 = vmatprep.subr.bf16.mxu1 %v1486_v2 }
  0x25   :  { %1319 = vmatmul.mubr.msk.f32.gmra.mrb[14].mxu0 %vm28_vm2, %v1133_v24  ;;  %1340 = vmatmul.mubr.msk.f32.gmra.mrb[14].mxu1 %vm28_vm2, %v1144_v25 }
  0x26   :  { %1321 = vmatprep.mubr.msk.f32.mxu0 %vm1487_vm0, %v1488_v4  ;;  %1342 = vmatprep.mubr.msk.f32.mxu1 %vm1487_vm0, %v1488_v4 }
  0x29   :  { %1322 = vmatmul.mubr.msk.f32.gmra.mrb[16].mxu0 %vm28_vm2, %v1134_v26  ;;  %1343 = vmatmul.mubr.msk.f32.gmra.mrb[16].mxu1 %vm28_vm2, %v1145_v27 }
  0x2a   :  { %1324 = vmatprep.mubr.msk.f32.mxu0 %vm1487_vm0, %v1488_v4  ;;  %1345 = vmatprep.mubr.msk.f32.mxu1 %vm1487_vm0, %v1488_v4 }
  0x2d   :  { %1325 = vmatmul.mubr.msk.f32.gmra.mrb[18].mxu0 %vm28_vm2, %v1135_v28  ;;  %1346 = vmatmul.mubr.msk.f32.gmra.mrb[18].mxu1 %vm28_vm2, %v1146_v29 }
  0x2e   :  { %1354 = vmatprep.mubr.msk.f32.mxu0 %vm1487_vm0, %v1488_v4  ;;  %1375 = vmatprep.mubr.msk.f32.mxu1 %vm1487_vm0, %v1488_v4 }
  0x31   :  { %1355 = vmatmul.mubr.msk.f32.vlgmr.msra.gmra.mrb[20].mxu0 %vm28_vm2, %v1532_v6  ;;  %1376 = vmatmul.mubr.msk.f32.vlgmr.msra.gmra.mrb[20].mxu1 %vm28_vm2, %v1537_v7 }
  0x32   :  { %1452 = vmatpush3.bf16.msra.mxu0 %v1445_v20  ;;  %1455 = vmatpush3.bf16.msra.mxu1 %v1445_v20 }
  0x33   :  { %1357 = vmatprep.mubr.msk.f32.mxu0 %vm1487_vm0, %v1488_v4  ;;  %1378 = vmatprep.mubr.msk.f32.mxu1 %vm1487_vm0, %v1488_v4 }
  0x34   :  { %1394 = vmatprep.subr.mxu0 %v1488_v4  ;;  %1415 = vmatprep.subr.mxu1 %v1488_v4 }
  0x35   :  { %1358 = vmatmul.mubr.msk.f32.gmra.mrb[22].mxu0 %vm28_vm2, %v1550_v8  ;;  %1379 = vmatmul.mubr.msk.f32.gmra.mrb[22].mxu1 %vm28_vm2, %v1555_v9  ;;  %v1827_v8 = vld [vmem:[%s1942_s1 + $0x20] sm:$0x3] }
  0x36   :  { %1360 = vmatprep.mubr.msk.f32.mxu0 %vm1487_vm0, %v1488_v4  ;;  %1381 = vmatprep.mubr.msk.f32.mxu1 %vm1487_vm0, %v1488_v4 }
  0x37   :  { %1395 = vmatpush3.msk.msra.mxu0 %vm44_vm1, %v1155_v23  ;;  %1416 = vmatpush3.msk.msra.mxu1 %vm44_vm1, %v1155_v23 }
  0x39   :  { %1361 = vmatmul.mubr.msk.f32.gmra.mrb[24].mxu0 %vm28_vm2, %v1572_v10  ;;  %1382 = vmatmul.mubr.msk.f32.gmra.mrb[24].mxu1 %vm28_vm2, %v1577_v11 }
  0x3a   :  { %1363 = vmatprep.mubr.msk.f32.mxu0 %vm1487_vm0, %v1488_v4  ;;  %1384 = vmatprep.mubr.msk.f32.mxu1 %vm1487_vm0, %v1488_v4 }
  0x3d   :  { %1364 = vmatmul.mubr.msk.f32.gmra.mrb[26].mxu0 %vm28_vm2, %v1594_v12  ;;  %1385 = vmatmul.mubr.msk.f32.gmra.mrb[26].mxu1 %vm28_vm2, %v1599_v13 }
  0x3e   :  { %1366 = vmatprep.mubr.msk.f32.mxu0 %vm1487_vm0, %v1488_v4  ;;  %1387 = vmatprep.mubr.msk.f32.mxu1 %vm1487_vm0, %v1488_v4 }
  0x41   :  { %1367 = vmatmul.mubr.msk.f32.gmra.mrb[28].mxu0 %vm28_vm2, %v574_v30  ;;  %1388 = vmatmul.mubr.msk.f32.gmra.mrb[28].mxu1 %vm28_vm2, %v1171_v31 }
  0x42   :  { %1396 = vmatprep.mubr.msk.f32.mxu0 %vm1487_vm0, %v1488_v4  ;;  %1417 = vmatprep.mubr.msk.f32.mxu1 %vm1487_vm0, %v1488_v4 }
  0x45   :  { %1397 = vmatmul.mubr.msk.f32.vlgmr.msra.gmra.mrb[30].mxu0 %vm28_vm2, %v1632_v18  ;;  %1418 = vmatmul.mubr.msk.f32.vlgmr.msra.gmra.mrb[30].mxu1 %vm28_vm2, %v1637_v19 }
  0x46   :  { %1399 = vmatprep.mubr.msk.f32.mxu0 %vm1487_vm0, %v1488_v4  ;;  %1420 = vmatprep.mubr.msk.f32.mxu1 %vm1487_vm0, %v1488_v4 }
  0x49   :  { %1400 = vmatmul.mubr.msk.f32.gmra.mrb[32].mxu0 %vm28_vm2, %v1646_v21  ;;  %1421 = vmatmul.mubr.msk.f32.gmra.mrb[32].mxu1 %vm28_vm2, %v1651_v22 }
  0x4a   :  { %1402 = vmatprep.mubr.msk.f32.mxu0 %vm1487_vm0, %v1488_v4  ;;  %1423 = vmatprep.mubr.msk.f32.mxu1 %vm1487_vm0, %v1488_v4 }
  0x4d   :  { %1403 = vmatmul.mubr.msk.f32.gmra.mrb[34].mxu0 %vm28_vm2, %v1133_v24  ;;  %1424 = vmatmul.mubr.msk.f32.gmra.mrb[34].mxu1 %vm28_vm2, %v1144_v25 }
  0x4e   :  { %1405 = vmatprep.mubr.msk.f32.mxu0 %vm1487_vm0, %v1488_v4  ;;  %1426 = vmatprep.mubr.msk.f32.mxu1 %vm1487_vm0, %v1488_v4 }
  0x51   :  { %1406 = vmatmul.mubr.msk.f32.gmra.mrb[36].mxu0 %vm28_vm2, %v1134_v26  ;;  %1427 = vmatmul.mubr.msk.f32.gmra.mrb[36].mxu1 %vm28_vm2, %v1145_v27 }
  0x52   :  { %1408 = vmatprep.mubr.msk.f32.mxu0 %vm1487_vm0, %v1488_v4  ;;  %1429 = vmatprep.mubr.msk.f32.mxu1 %vm1487_vm0, %v1488_v4 }
  0x55   :  { %1409 = vmatmul.mubr.msk.f32.gmra.mrb[38].mxu0 %vm28_vm2, %v1182_v32  ;;  %1430 = vmatmul.mubr.msk.f32.gmra.mrb[38].mxu1 %vm28_vm2, %v1193_v33 }
  0xdc   :  { %v114_v35 = vpop.f32.mrb[0].mxu0  ;;  %v247_v36 = vpop.f32.mrb[0].mxu1 }
  0xdd   :  { %v1272_v37 = vpop.f32.mrb[1].mxu0  ;;  %v1293_v38 = vpop.f32.mrb[1].mxu1  ;;  %v138_v40 = vmul.f32 %v114_v35, %v18_v34  ;;  %v271_v41 = vmul.f32 %v247_v36, %v18_v34 }
  0xdf   :  { %v144_v49 = vsel %vm143_vm3, %v138_v40, 0.0  ;;  %v276_v50 = vsel %vm143_vm3, %v271_v41, 0.0 }
  0xe0   :  { %v119_v42 = vpop.f32.mrb[2].mxu0  ;;  %v252_v43 = vpop.f32.mrb[2].mxu1 }
  0xe1   :  { %v139_v44 = vmul.f32 %v119_v42, %v1800_v39  ;;  %v272_v45 = vmul.f32 %v252_v43, %v1800_v39  ;;  %v1275_v46 = vpop.f32.mrb[3].mxu0  ;;  %v1296_v47 = vpop.f32.mrb[3].mxu1 }
  0xe3   :  { %v145_v51 = vsel %vm143_vm3, %v139_v44, 0.0  ;;  %v277_v52 = vsel %vm143_vm3, %v272_v45, 0.0 }
  0xe4   :  { %v146_v53 = vadd.f32 %v145_v51, %v144_v49  ;;  %v278_v54 = vadd.f32 %v277_v52, %v276_v50  ;;  %v124_v55 = vpop.f32.mrb[4].mxu0  ;;  %v257_v56 = vpop.f32.mrb[4].mxu1 }
  0xe5   :  { %v140_v57 = vmul.f32 %v124_v55, %v1807_v48  ;;  %v273_v58 = vmul.f32 %v257_v56, %v1807_v48  ;;  %v1278_v59 = vpop.f32.mrb[5].mxu0  ;;  %v1299_v60 = vpop.f32.mrb[5].mxu1 }
  0xe7   :  { %v147_v62 = vsel %vm143_vm3, %v140_v57, 0.0  ;;  %v279_v63 = vsel %vm143_vm3, %v273_v58, 0.0 }
  0xe8   :  { %v148_v0 = vadd.f32 %v147_v62, %v146_v53  ;;  %v280_v1 = vadd.f32 %v279_v63, %v278_v54  ;;  %v129_v2 = vpop.f32.mrb[6].mxu0  ;;  %v262_v3 = vpop.f32.mrb[6].mxu1 }
  0xe9   :  { %v141_v4 = vmul.f32 %v129_v2, %v1818_v61  ;;  %v274_v5 = vmul.f32 %v262_v3, %v1818_v61  ;;  %v1281_v6 = vpop.f32.mrb[7].mxu0  ;;  %v1302_v7 = vpop.f32.mrb[7].mxu1 }
  0xeb   :  { %v149_v9 = vsel %vm143_vm3, %v141_v4, 0.0  ;;  %v281_v10 = vsel %vm143_vm3, %v274_v5, 0.0 }
  0xec   :  { %v150_v11 = vadd.f32 %v149_v9, %v148_v0  ;;  %v282_v12 = vadd.f32 %v281_v10, %v280_v1  ;;  %v134_v13 = vpop.f32.mrb[8].mxu0  ;;  %v267_v14 = vpop.f32.mrb[8].mxu1 }
  0xed   :  { %v142_v15 = vmul.f32 %v134_v13, %v1827_v8  ;;  %v275_v16 = vmul.f32 %v267_v14, %v1827_v8  ;;  %v1284_v17 = vpop.f32.mrb[9].mxu0  ;;  %v1305_v18 = vpop.f32.mrb[9].mxu1 }
  0xef   :  { %v152_v19 = vsel %vm151_vm4, %v142_v15, 0.0  ;;  %v283_v20 = vsel %vm151_vm4, %v275_v16, 0.0 }
  0xf0   :  { %v153_v21 = vadd.f32 %v152_v19, %v150_v11  ;;  %v284_v22 = vadd.f32 %v283_v20, %v282_v12  ;;  %v378_v23 = vpop.f32.mrb[10].mxu0  ;;  %v509_v24 = vpop.f32.mrb[10].mxu1 }
  0xf1   :  { %v1314_v25 = vpop.f32.mrb[11].mxu0  ;;  %v1335_v26 = vpop.f32.mrb[11].mxu1  ;;  %v402_v29 = vmul.f32 %v378_v23, %v18_v34  ;;  %v533_v30 = vmul.f32 %v509_v24, %v18_v34 }
  0xf2   :  { %v154_v27 = vrot.slane %v153_v21, 4  ;;  %v285_v28 = vrot.slane %v284_v22, 4 }
  0xf3   :  { %v407_v43 = vsel %vm143_vm3, %v402_v29, 0.0  ;;  %v538_v44 = vsel %vm143_vm3, %v533_v30, 0.0 }
  0xf4   :  { %v155_v31 = vadd.f32 %v154_v27, %v153_v21  ;;  %v286_v32 = vadd.f32 %v285_v28, %v284_v22  ;;  %v383_v33 = vpop.f32.mrb[12].mxu0  ;;  %v514_v35 = vpop.f32.mrb[12].mxu1  ;;  %v1859_v21 = vld [vmem:[%s1942_s1 + $0x28] sm:$0xff] }
  0xf5   :  { %v403_v36 = vmul.f32 %v383_v33, %v1800_v39  ;;  %v534_v37 = vmul.f32 %v514_v35, %v1800_v39  ;;  %v1317_v38 = vpop.f32.mrb[13].mxu0  ;;  %v1338_v40 = vpop.f32.mrb[13].mxu1 }
  0xf6   :  { %v156_v41 = vrot.slane %v155_v31, 2  ;;  %v287_v42 = vrot.slane %v286_v32, 2 }
  0xf7   :  { %v408_v45 = vsel %vm143_vm3, %v403_v36, 0.0  ;;  %v539_v34 = vsel %vm143_vm3, %v534_v37, 0.0 }
  0xf8   :  { %v157_v46 = vadd.f32 %v156_v41, %v155_v31  ;;  %v288_v47 = vadd.f32 %v287_v42, %v286_v32  ;;  %v409_v49 = vadd.f32 %v408_v45, %v407_v43  ;;  %v540_v50 = vadd.f32 %v539_v34, %v538_v44  ;;  %v388_v51 = vpop.f32.mrb[14].mxu0  ;;  %v519_v52 = vpop.f32.mrb[14].mxu1  ;;  %v1873_v42 = vld [vmem:[%s1942_s1 + $0x38] sm:$0xff] }
  0xf9   :  { %v404_v39 = vmul.f32 %v388_v51, %v1807_v48  ;;  %v535_v53 = vmul.f32 %v519_v52, %v1807_v48  ;;  %v1320_v54 = vpop.f32.mrb[15].mxu0  ;;  %v1341_v55 = vpop.f32.mrb[15].mxu1 }
  0xfa   :  { %v158_v56 = vrot.slane %v157_v46, 1  ;;  %v289_v57 = vrot.slane %v288_v47, 1 }
  0xfb   :  { %v410_v58 = vsel %vm143_vm3, %v404_v39, 0.0  ;;  %v541_v59 = vsel %vm143_vm3, %v535_v53, 0.0 }
  0xfc   :  { %v159_v60 = vadd.f32 %v158_v56, %v157_v46  ;;  %v290_v62 = vadd.f32 %v289_v57, %v288_v47  ;;  %v411_v63 = vadd.f32 %v410_v58, %v409_v49  ;;  %v542_v0 = vadd.f32 %v541_v59, %v540_v50  ;;  %v393_v1 = vpop.f32.mrb[16].mxu0  ;;  %v524_v2 = vpop.f32.mrb[16].mxu1  ;;  %v1884_v58 = vld [vmem:[%s1942_s1 + $0x40] sm:$0xff] }
  0xfd   :  { %v405_v3 = vmul.f32 %v393_v1, %v1818_v61  ;;  %v536_v4 = vmul.f32 %v524_v2, %v1818_v61  ;;  %v1323_v5 = vpop.f32.mrb[17].mxu0  ;;  %v1344_v48 = vpop.f32.mrb[17].mxu1 }
  0xfe   :  { %v1848_v6 = vsel %vm44_vm1, %v159_v60, %v290_v62 }
  0xff   :  { %v412_v7 = vsel %vm143_vm3, %v405_v3, 0.0  ;;  %v543_v9 = vsel %vm143_vm3, %v536_v4, 0.0 }
 0x100   :  { %v413_v10 = vadd.f32 %v412_v7, %v411_v63  ;;  %v544_v11 = vadd.f32 %v543_v9, %v542_v0  ;;  %v398_v12 = vpop.f32.mrb[18].mxu0  ;;  %v529_v13 = vpop.f32.mrb[18].mxu1  ;;  %v1893_v9 = vld [vmem:[%s1942_s1 + $0x48] sm:$0x3] }
 0x101   :  { %v406_v14 = vmul.f32 %v398_v12, %v1827_v8  ;;  %v537_v15 = vmul.f32 %v529_v13, %v1827_v8  ;;  %v1326_v16 = vpop.f32.mrb[19].mxu0  ;;  %v1347_v17 = vpop.f32.mrb[19].mxu1  ;;  %v1864_v8 = vld [vmem:[%s1942_s1 + $0x30] sm:$0xff]  ;;  %s1489_s1 = smov [#allocation2]  }
 0x102   :  { %s1103_s8 = sshll.u32 %s1489_s1, 4  ;;  %s1104_s8 = int_to_ptr.vmem [resolvable:$true] %s1103_s8 }
 0x103   :  { %v414_v61 = vsel %vm151_vm4, %v406_v14, 0.0  ;;  %v545_v18 = vsel %vm151_vm4, %v537_v15, 0.0  ;;  %s1462_s9 = scalar_lea.vmem %s1104_s8, 128  ;;  %p1467_p1 = scmp.lt.s32.totalorder %s1104_s8, %s1104_s8 }
 0x104   :  { %v415_v19 = vadd.f32 %v414_v61, %v413_v10  ;;  %v546_v20 = vadd.f32 %v545_v18, %v544_v11  ;;  %v659_v22 = vpop.f32.mrb[20].mxu0  ;;  %v789_v23 = vpop.f32.mrb[20].mxu1  ;;  %p1463_p0 = scmp.ne.s32.totalorder %s1104_s8, %s1462_s9  ;;  %p1468_p2 = scmp.lt.s32.totalorder %s1462_s9, %s1462_s9 }
 0x105   :  { %v1356_v24 = vpop.f32.mrb[21].mxu0  ;;  %v1377_v25 = vpop.f32.mrb[21].mxu1  ;;  %v683_v28 = vmul.f32 %v1859_v21, %v659_v22  ;;  %v813_v29 = vmul.f32 %v1859_v21, %v789_v23 }
 0x106   :  { %v416_v26 = vrot.slane %v415_v19, 4  ;;  %v547_v27 = vrot.slane %v546_v20, 4  ;;  %p1469_p3 = por %p1468_p2, %p1467_p1 }
 0x107   :  { %v688_v43 = vsel %vm143_vm3, %v683_v28, 0.0  ;;  %v818_v44 = vsel %vm143_vm3, %v813_v29, 0.0 }
 0x108   :  { %v417_v30 = vadd.f32 %v416_v26, %v415_v19  ;;  %v548_v31 = vadd.f32 %v547_v27, %v546_v20  ;;  %v664_v32 = vpop.f32.mrb[22].mxu0  ;;  %v794_v33 = vpop.f32.mrb[22].mxu1  ;;  %p1470_p4 = pnand %p1469_p3, %p1463_p0 }
 0x109   :  { %v684_v35 = vmul.f32 %v1864_v8, %v664_v32  ;;  %v814_v36 = vmul.f32 %v1864_v8, %v794_v33  ;;  %v1359_v37 = vpop.f32.mrb[23].mxu0  ;;  %v1380_v38 = vpop.f32.mrb[23].mxu1 }
 0x10a   :  { %v418_v40 = vrot.slane %v417_v30, 2  ;;  %v549_v41 = vrot.slane %v548_v31, 2 }
 0x10b   :  { %v689_v45 = vsel %vm143_vm3, %v684_v35, 0.0  ;;  %v819_v34 = vsel %vm143_vm3, %v814_v36, 0.0 }
 0x10c   :  { %v419_v46 = vadd.f32 %v418_v40, %v417_v30  ;;  %v550_v47 = vadd.f32 %v549_v41, %v548_v31  ;;  %v690_v49 = vadd.f32 %v689_v45, %v688_v43  ;;  %v820_v50 = vadd.f32 %v819_v34, %v818_v44  ;;  %v669_v51 = vpop.f32.mrb[24].mxu0  ;;  %v799_v52 = vpop.f32.mrb[24].mxu1 }
 0x10d   :  { %v685_v39 = vmul.f32 %v1873_v42, %v669_v51  ;;  %v815_v53 = vmul.f32 %v1873_v42, %v799_v52  ;;  %v1362_v54 = vpop.f32.mrb[25].mxu0  ;;  %v1383_v55 = vpop.f32.mrb[25].mxu1 }
 0x10e   :  { %v420_v56 = vrot.slane %v419_v46, 1  ;;  %v551_v57 = vrot.slane %v550_v47, 1 }
 0x10f   :  { %v691_v59 = vsel %vm143_vm3, %v685_v39, 0.0  ;;  %v821_v60 = vsel %vm143_vm3, %v815_v53, 0.0 }
 0x110   :  { %v421_v62 = vadd.f32 %v420_v56, %v419_v46  ;;  %v552_v63 = vadd.f32 %v551_v57, %v550_v47  ;;  %v692_v0 = vadd.f32 %v691_v59, %v690_v49  ;;  %v822_v1 = vadd.f32 %v821_v60, %v820_v50  ;;  %v674_v2 = vpop.f32.mrb[26].mxu0  ;;  %v804_v3 = vpop.f32.mrb[26].mxu1 }
 0x111   :  { %v686_v4 = vmul.f32 %v1884_v58, %v674_v2  ;;  %v816_v5 = vmul.f32 %v1884_v58, %v804_v3  ;;  %v1365_v48 = vpop.f32.mrb[27].mxu0  ;;  %v1386_v7 = vpop.f32.mrb[27].mxu1 }
 0x112   :  { %v555_v10 = vsel %vm554_vm5, %v1848_v6, %v421_v62 }
 0x113   :  { %v693_v11 = vsel %vm143_vm3, %v686_v4, 0.0  ;;  %v823_v12 = vsel %vm143_vm3, %v816_v5, 0.0  ;;  %v557_v13 = vsel %vm556_vm6, %v555_v10, %v552_v63 }
 0x114   :  { %v694_v14 = vadd.f32 %v693_v11, %v692_v0  ;;  %v824_v15 = vadd.f32 %v823_v12, %v822_v1  ;;  %v679_v16 = vpop.f32.mrb[28].mxu0  ;;  %v809_v17 = vpop.f32.mrb[28].mxu1  ;;  %559 = vst.msk [vmem:[#allocation2] sm:$0xf] %vm558_vm7, %v557_v13 }
 0x115   :  { %v687_v61 = vmul.f32 %v1893_v9, %v679_v16  ;;  %v817_v18 = vmul.f32 %v1893_v9, %v809_v17  ;;  %v1368_v19 = vpop.f32.mrb[29].mxu0  ;;  %v1389_v20 = vpop.f32.mrb[29].mxu1 }
 0x117   :  { %v695_v6 = vsel %vm151_vm4, %v687_v61, 0.0  ;;  %v825_v22 = vsel %vm151_vm4, %v817_v18, 0.0 }
 0x118   :  { %v696_v23 = vadd.f32 %v695_v6, %v694_v14  ;;  %v826_v24 = vadd.f32 %v825_v22, %v824_v15  ;;  %v919_v25 = vpop.f32.mrb[30].mxu0  ;;  %v1049_v26 = vpop.f32.mrb[30].mxu1 }
 0x119   :  { %v1398_v27 = vpop.f32.mrb[31].mxu0  ;;  %v1419_v28 = vpop.f32.mrb[31].mxu1  ;;  %v943_v31 = vmul.f32 %v1859_v21, %v919_v25  ;;  %v1073_v32 = vmul.f32 %v1859_v21, %v1049_v26 }
 0x11a   :  { %v697_v29 = vrot.slane %v696_v23, 4  ;;  %v827_v30 = vrot.slane %v826_v24, 4 }
 0x11b   :  { %v948_v34 = vsel %vm143_vm3, %v943_v31, 0.0  ;;  %v1078_v46 = vsel %vm143_vm3, %v1073_v32, 0.0 }
 0x11c   :  { %v698_v33 = vadd.f32 %v697_v29, %v696_v23  ;;  %v828_v35 = vadd.f32 %v827_v30, %v826_v24  ;;  %v924_v36 = vpop.f32.mrb[32].mxu0  ;;  %v1054_v37 = vpop.f32.mrb[32].mxu1 }
 0x11d   :  { %v944_v38 = vmul.f32 %v1864_v8, %v924_v36  ;;  %v1074_v40 = vmul.f32 %v1864_v8, %v1054_v37  ;;  %v1401_v41 = vpop.f32.mrb[33].mxu0  ;;  %v1422_v43 = vpop.f32.mrb[33].mxu1 }
 0x11e   :  { %v699_v44 = vrot.slane %v698_v33, 2  ;;  %v829_v45 = vrot.slane %v828_v35, 2 }
 0x11f   :  { %v949_v47 = vsel %vm143_vm3, %v944_v38, 0.0  ;;  %v1079_v21 = vsel %vm143_vm3, %v1074_v40, 0.0 }
 0x120   :  { %v700_v49 = vadd.f32 %v699_v44, %v698_v33  ;;  %v830_v50 = vadd.f32 %v829_v45, %v828_v35  ;;  %v950_v51 = vadd.f32 %v949_v47, %v948_v34  ;;  %v1080_v52 = vadd.f32 %v1079_v21, %v1078_v46  ;;  %v929_v39 = vpop.f32.mrb[34].mxu0  ;;  %v1059_v53 = vpop.f32.mrb[34].mxu1 }
 0x121   :  { %v945_v8 = vmul.f32 %v1873_v42, %v929_v39  ;;  %v1075_v54 = vmul.f32 %v1873_v42, %v1059_v53  ;;  %v1404_v55 = vpop.f32.mrb[35].mxu0  ;;  %v1425_v56 = vpop.f32.mrb[35].mxu1 }
 0x122   :  { %v701_v57 = vrot.slane %v700_v49, 1  ;;  %v831_v59 = vrot.slane %v830_v50, 1 }
 0x123   :  { %v951_v60 = vsel %vm143_vm3, %v945_v8, 0.0  ;;  %v1081_v62 = vsel %vm143_vm3, %v1075_v54, 0.0 }
 0x124   :  { %v702_v63 = vadd.f32 %v701_v57, %v700_v49  ;;  %v832_v0 = vadd.f32 %v831_v59, %v830_v50  ;;  %v952_v1 = vadd.f32 %v951_v60, %v950_v51  ;;  %v1082_v2 = vadd.f32 %v1081_v62, %v1080_v52  ;;  %v934_v3 = vpop.f32.mrb[36].mxu0  ;;  %v1064_v4 = vpop.f32.mrb[36].mxu1 }
 0x125   :  { %v946_v5 = vmul.f32 %v1884_v58, %v934_v3  ;;  %v1076_v48 = vmul.f32 %v1884_v58, %v1064_v4  ;;  %v1407_v7 = vpop.f32.mrb[37].mxu0  ;;  %v1428_v42 = vpop.f32.mrb[37].mxu1 }
 0x126   :  { %v1093_v10 = vsel %vm44_vm1, %v702_v63, %v832_v0 }
 0x127   :  { %v953_v11 = vsel %vm143_vm3, %v946_v5, 0.0  ;;  %v1083_v12 = vsel %vm143_vm3, %v1076_v48, 0.0 }
 0x128   :  { %v954_v13 = vadd.f32 %v953_v11, %v952_v1  ;;  %v1084_v14 = vadd.f32 %v1083_v12, %v1082_v2  ;;  %v939_v15 = vpop.f32.mrb[38].mxu0  ;;  %v1069_v16 = vpop.f32.mrb[38].mxu1 }
 0x129   :  { %v947_v17 = vmul.f32 %v1893_v9, %v939_v15  ;;  %v1077_v61 = vmul.f32 %v1893_v9, %v1069_v16  ;;  %v1410_v18 = vpop.f32.mrb[39].mxu0  ;;  %v1431_v19 = vpop.f32.mrb[39].mxu1 }
 0x12b   :  { %v955_v58 = vsel %vm151_vm4, %v947_v17, 0.0  ;;  %v1085_v20 = vsel %vm151_vm4, %v1077_v61, 0.0 }
 0x12c   :  { %v956_v6 = vadd.f32 %v955_v58, %v954_v13  ;;  %v1086_v22 = vadd.f32 %v1085_v20, %v1084_v14 }
 0x12e   :  { %v957_v23 = vrot.slane %v956_v6, 4  ;;  %v1087_v24 = vrot.slane %v1086_v22, 4 }
 0x130   :  { %v958_v25 = vadd.f32 %v957_v23, %v956_v6  ;;  %v1088_v26 = vadd.f32 %v1087_v24, %v1086_v22 }
 0x132   :  { %v959_v27 = vrot.slane %v958_v25, 2  ;;  %v1089_v28 = vrot.slane %v1088_v26, 2 }
 0x134   :  { %v960_v29 = vadd.f32 %v959_v27, %v958_v25  ;;  %v1090_v30 = vadd.f32 %v1089_v28, %v1088_v26 }
 0x136   :  { %v961_v31 = vrot.slane %v960_v29, 1  ;;  %v1091_v32 = vrot.slane %v1090_v30, 1 }
 0x138   :  { %v962_v9 = vadd.f32 %v961_v31, %v960_v29  ;;  %v1092_v33 = vadd.f32 %v1091_v32, %v1090_v30 }
 0x13a   :  { %v1094_v35 = vsel %vm554_vm5, %v1093_v10, %v962_v9 }
 0x13b   :  { %v1095_v36 = vsel %vm556_vm6, %v1094_v35, %v1092_v33 }
 0x13c   :  { %1097 = vst.msk [vmem:[#allocation2 + $0x4] sm:$0xf] %vm558_vm7, %v1095_v36 }
 0x13d   :  { %1473 = shalt.err (!%p1470_p4)
}
 0x13e   :  { %s1474_s12 = scalar_lea.hbm %s1944_s3, 128 }
 0x13f   :  { %p1475_p5 = scmp.ne.s32.totalorder %s1944_s3, %s1474_s12  ;;  %p1478_p6 = scmp.lt.u32.totalorder %s1474_s12, %s1944_s3 }
 0x141   :  { %p1480_p7 = pnand %p1478_p6, %p1475_p5 }
 0x143   :  { %1483 = shalt.err (!%p1480_p7)
}
 0x144   :  { %s1490_s17 = smov 64   ;;  %s1491_s18 = smov 4  }
 0x145   :  { %1109 = dma.vmem_to_hbm [thread:$0]  %s1104_s8, 128, %s1944_s3, [#allocation3], %s1490_s17, %s1490_s17, %s1491_s18  }
 0x146   :  { %1484 = dma.done.wait [#allocation3], 128  }
 0x147   :  { %1485 = vsyncadd [#allocation3], 4294967168 }
 0x148   :  { %1113 = vsyncpa [#allocation3], 1 }

</bundles_post_ra>
